<compile_context>
chip_gen: v7x
topology: tpu7x:2x2x1
jax: 0.10.0
libtpu: 0.0.40
codegen_flags: <defaults>
</compile_context>

<pallas_src>
import functools

import jax
import jax.numpy as jnp
from jax.experimental import pallas as pl
from jax.experimental.pallas import tpu as pltpu

EPS = 1e-8


def _softmax_last(x):
    m = jnp.max(x, axis=-1, keepdims=True)
    e = jnp.exp(x - m)
    return e / jnp.sum(e, axis=-1, keepdims=True)


def ccloss3_kernel(anchors_ref, neighbors_ref, disks_ref, out_ref, *, k):
    """Per batch-block partial sums, packed into one lane-dense (1, 1, 128) row.

    Lane layout of the output row (n = num_classes):
      lanes [0, n) : sum over block rows of anchors_prob          (-> entropy)
      lane  n      : sum over block rows of clamp(log(sim_p), -100) (-> Pos_loss)
      lane  n + 1  : sum over block rows of log(1 + sum_k sim_n)    (-> Neg_loss)
    """
    a = anchors_ref[...].astype(jnp.float32)       # [tb, n]
    nb = neighbors_ref[...].astype(jnp.float32)    # [tb, n]
    tb, n = a.shape

    anchors_prob = _softmax_last(a)                # softmax over classes
    positives_prob = _softmax_last(nb)

    # similarity_p[i] = <anchors_prob[i], positives_prob[i]>  (the bmm in torch)
    sim_p = jnp.sum(anchors_prob * positives_prob, axis=1, keepdims=True)  # [tb,1]

    t = 1.5
    norm_ij = jnp.sum((anchors_prob - positives_prob) ** 2, axis=1, keepdims=True)
    p_weight = jnp.exp(-norm_ij / t)
    # NOTE: n_weight is computed but never used in the reference module -> omitted.
    sim_p = sim_p * p_weight

    # BCE(sim_p, ones): partial = sum(clamp(log(sim_p), -100)); wrapper does -sum/b.
    log_p = jnp.maximum(jnp.log(sim_p), -100.0)
    pos_partial = jnp.sum(log_p)

    # sum_k similarity_n[b, k] without materializing disks_prob or any [tb, k, n]
    # temporary: the flat [tb*k, n] block is read k times with sublane-strided
    # loads, so every max / exp / sum / multiply runs on a dense (tb, n) layout
    # and anchors_prob is reused from vregs (no repeat / relayout).
    sum_sim_n = jnp.zeros((tb, 1), jnp.float32)
    for kk in range(k):  # static, tiny unroll (k is small, e.g. 4)
        d_k = disks_ref[pl.ds(kk, tb, stride=k), :].astype(jnp.float32)   # [tb, n]
        d_max = jnp.max(d_k, axis=1, keepdims=True)
        d_exp = jnp.exp(d_k - d_max)
        denom = jnp.sum(d_exp, axis=1, keepdims=True)                     # softmax denom
        num = jnp.sum(anchors_prob * d_exp, axis=1, keepdims=True)        # contraction
        sum_sim_n = sum_sim_n + num / denom
    neg_partial = jnp.sum(jnp.log(1.0 + sum_sim_n))

    # Partial column-sum of anchors_prob (wrapper: /b, clamp at EPS, entropy).
    prob_sum = jnp.sum(anchors_prob, axis=0, keepdims=True)               # [1, n]

    out_ref[...] = jnp.zeros_like(out_ref)
    out_ref[:, :, 0:n] = prob_sum.reshape(1, 1, n)
    out_ref[:, :, n:n + 1] = jnp.full((1, 1, 1), pos_partial, jnp.float32)
    out_ref[:, :, n + 1:n + 2] = jnp.full((1, 1, 1), neg_partial, jnp.float32)


def _pick_tile_b(b, row_bytes):
    """Largest batch tile that divides b, obeys the (8,128) rule and fits the
    scoped-VMEM default with double buffering and headroom (fits v5e/v6e/v7x)."""
    budget = 12 << 20
    max_tile = max(8, budget // max(int(row_bytes), 1))
    tile = int(min(b, 4096, max_tile))
    if tile >= b:
        return b
    tile = (tile // 8) * 8
    while tile >= 8 and b % tile != 0:
        tile -= 8
    if tile < 8:
        # TODO(synk): pad/mask ragged batches instead of whole-batch fallback.
        return b
    return tile


def ccloss3(anchors, neighbors, disks, epoch, entropy_weight=2.0):
    """Returns (Pos_loss, Neg_loss, total_loss, consistency_loss, entropy_loss)."""
    b, n = anchors.shape
    k = disks.shape[1]
    assert n + 2 <= 128, "TODO(synk): spill prob_sum to a second output for n > 126"

    # Free, bit-compatible flatten: the kernel reads the k per-row disk views
    # with sublane-strided loads from this dense 2-D layout.
    disks_flat = disks.reshape(b * k, n)

    a_item = jnp.dtype(anchors.dtype).itemsize
    d_item = jnp.dtype(disks.dtype).itemsize
    row_bytes = 2 * (2 * n * a_item + k * n * d_item)     # per batch row, double-buffered
    tile_b = _pick_tile_b(b, row_bytes)
    num_blocks = b // tile_b

    cost = pl.CostEstimate(
        flops=12 * b * n + 6 * b * k * n,
        transcendentals=2 * b * n + b * k * n + 4 * b + n,
        bytes_accessed=int(2 * b * n * a_item + b * k * n * d_item
                           + 4 * num_blocks * 128),
    )

    parts = pl.pallas_call(
        functools.partial(ccloss3_kernel, k=k),
        out_shape=jax.ShapeDtypeStruct((num_blocks, 1, 128), jnp.float32),
        grid=(num_blocks,),
        in_specs=[
            pl.BlockSpec((tile_b, n), lambda i: (i, 0)),        # anchors
            pl.BlockSpec((tile_b, n), lambda i: (i, 0)),        # neighbors
            pl.BlockSpec((tile_b * k, n), lambda i: (i, 0)),    # disks (flat [b*k, n])
        ],
        out_specs=pl.BlockSpec((1, 1, 128), lambda i: (i, 0, 0)),
        compiler_params=pltpu.CompilerParams(
            dimension_semantics=("parallel",)),
        cost_estimate=cost,
    )(anchors, neighbors, disks_flat)

    # Finish the (tiny) reduction in the wrapper so the grid axis stays parallel.
    rows = parts[:, 0, :]                                    # [num_blocks, 128]
    prob_sum = jnp.sum(rows[:, 0:n], axis=0)                 # [n]
    pos_sum = jnp.sum(rows[:, n])
    neg_sum = jnp.sum(rows[:, n + 1])

    bf = jnp.float32(b)
    pos_loss = -pos_sum / bf                                  # BCE mean reduction
    epoch = jnp.asarray(epoch, jnp.int32)
    eta = jnp.where(epoch < 15, jnp.float32(0.0), jnp.float32(10.0 / k))
    neg_loss = eta * neg_sum / bf
    consistency_loss = pos_loss + neg_loss

    mean_prob = jnp.maximum(prob_sum / bf, EPS)
    entropy_loss = -jnp.sum(mean_prob * jnp.log(mean_prob))
    total_loss = consistency_loss - jnp.asarray(entropy_weight, jnp.float32) * entropy_loss
    return pos_loss, neg_loss, total_loss, consistency_loss, entropy_loss


def ccloss3_ref(anchors, neighbors, disks, epoch, entropy_weight=2.0):
    """Pure-JAX reference mirroring the PyTorch module (for verification)."""
    ap = jax.nn.softmax(anchors, axis=1)
    pp = jax.nn.softmax(neighbors, axis=1)
    dp = jax.nn.softmax(disks, axis=2)
    sim_p = jnp.einsum('bn,bn->b', ap, pp)
    sim_n = jnp.einsum('ij,ikj->ik', ap, dp)
    t = 1.5
    p_weight = jnp.exp(-jnp.sum((ap - pp) ** 2, axis=1) / t)
    sim_p = sim_p * p_weight
    pos = -jnp.mean(jnp.maximum(jnp.log(sim_p), -100.0))
    b, k = sim_n.shape
    neg_sum = jnp.sum(jnp.log(1.0 + jnp.sum(sim_n, axis=1)))
    eta = 0.0 if int(epoch) < 15 else 10.0 / k
    neg = eta * neg_sum / b
    cons = pos + neg
    mp = jnp.maximum(jnp.mean(ap, axis=0), EPS)
    ent = -jnp.sum(mp * jnp.log(mp))
    total = cons - entropy_weight * ent
    return pos, neg, total, cons, ent


if __name__ == "__main__":
    b, n, k = 8, 32, 4          # batch, num_classes, num disk neighbors
    epoch = 20

    key = jax.random.PRNGKey(0)
    k1, k2, k3 = jax.random.split(key, 3)
    anchors = jax.random.normal(k1, (b, n), dtype=jnp.float32)
    neighbors = jax.random.normal(k2, (b, n), dtype=jnp.float32)
    disks = jax.random.normal(k3, (b, k, n), dtype=jnp.float32)

    outs = ccloss3(anchors, neighbors, disks, epoch, entropy_weight=2.0)
    outs = jax.block_until_ready(outs)

    refs = ccloss3_ref(anchors, neighbors, disks, epoch, entropy_weight=2.0)
    names = ["Pos_loss", "Neg_loss", "total_loss", "consistency_loss", "entropy_loss"]
    for name, got, want in zip(names, outs, refs):
        assert jnp.allclose(got, want, rtol=1e-5, atol=1e-5), (name, got, want)

    # Exercise the epoch < 15 branch as well (eta gate lives in the wrapper, so
    # the same compiled kernel serves both branches).
    outs_early = ccloss3(anchors, neighbors, disks, 5, entropy_weight=2.0)
    refs_early = ccloss3_ref(anchors, neighbors, disks, 5, entropy_weight=2.0)
    for name, got, want in zip(names, jax.block_until_ready(outs_early), refs_early):
        assert jnp.allclose(got, want, rtol=1e-5, atol=1e-5), (name, got, want)

    print("KERNEL_OK")
</pallas_src>

<mosaic_0001>
module attributes {stable_mosaic.version = 11 : i64} {
  func.func @ccloss3_kernel(%arg0: i32, %arg1: memref<8x32xf32, #tpu.memory_space<vmem>>, %arg2: memref<8x32xf32, #tpu.memory_space<vmem>>, %arg3: memref<32x32xf32, #tpu.memory_space<vmem>>, %arg4: memref<1x1x128xf32, #tpu.memory_space<vmem>>) attributes {dimension_semantics = [#tpu.dimension_semantics<parallel>], iteration_bounds = array<i64: 1>, scalar_prefetch = 0 : i64, scratch_operands = 0 : i64, tpu.core_type = #tpu.core_type<tc>, window_params = [{transform_indices = @transform_0, window_bounds = array<i64: 8, 32>}, {transform_indices = @transform_1, window_bounds = array<i64: 8, 32>}, {transform_indices = @transform_2, window_bounds = array<i64: 32, 32>}, {transform_indices = @transform_3, window_bounds = array<i64: 1, 1, 128>}]} {
    %c0 = arith.constant 0 : index
    %c0_0 = arith.constant 0 : index
    %0 = vector.load %arg1[%c0, %c0_0] : memref<8x32xf32, #tpu.memory_space<vmem>>, vector<8x32xf32>
    %c0_1 = arith.constant 0 : index
    %c0_2 = arith.constant 0 : index
    %1 = vector.load %arg2[%c0_1, %c0_2] : memref<8x32xf32, #tpu.memory_space<vmem>>, vector<8x32xf32>
    %cst = arith.constant dense<0xFF800000> : vector<8xf32>
    %2 = vector.multi_reduction <maximumf>, %0, %cst [1] : vector<8x32xf32> to vector<8xf32>
    %3 = vector.shape_cast %2 : vector<8xf32> to vector<8x1xf32>
    %4 = vector.broadcast %3 : vector<8x1xf32> to vector<8x32xf32>
    %5 = arith.subf %0, %4 : vector<8x32xf32>
    %6 = math.exp %5 : vector<8x32xf32>
    %cst_3 = arith.constant dense<0.000000e+00> : vector<8xf32>
    %7 = vector.multi_reduction <add>, %6, %cst_3 [1] : vector<8x32xf32> to vector<8xf32>
    %8 = vector.shape_cast %7 : vector<8xf32> to vector<8x1xf32>
    %9 = vector.broadcast %8 : vector<8x1xf32> to vector<8x32xf32>
    %10 = arith.divf %6, %9 : vector<8x32xf32>
    %cst_4 = arith.constant dense<0xFF800000> : vector<8xf32>
    %11 = vector.multi_reduction <maximumf>, %1, %cst_4 [1] : vector<8x32xf32> to vector<8xf32>
    %12 = vector.shape_cast %11 : vector<8xf32> to vector<8x1xf32>
    %13 = vector.broadcast %12 : vector<8x1xf32> to vector<8x32xf32>
    %14 = arith.subf %1, %13 : vector<8x32xf32>
    %15 = math.exp %14 : vector<8x32xf32>
    %cst_5 = arith.constant dense<0.000000e+00> : vector<8xf32>
    %16 = vector.multi_reduction <add>, %15, %cst_5 [1] : vector<8x32xf32> to vector<8xf32>
    %17 = vector.shape_cast %16 : vector<8xf32> to vector<8x1xf32>
    %18 = vector.broadcast %17 : vector<8x1xf32> to vector<8x32xf32>
    %19 = arith.divf %15, %18 : vector<8x32xf32>
    %20 = arith.mulf %10, %19 : vector<8x32xf32>
    %cst_6 = arith.constant dense<0.000000e+00> : vector<8xf32>
    %21 = vector.multi_reduction <add>, %20, %cst_6 [1] : vector<8x32xf32> to vector<8xf32>
    %22 = vector.shape_cast %21 : vector<8xf32> to vector<8x1xf32>
    %23 = arith.subf %10, %19 : vector<8x32xf32>
    %24 = arith.mulf %23, %23 : vector<8x32xf32>
    %cst_7 = arith.constant dense<0.000000e+00> : vector<8xf32>
    %25 = vector.multi_reduction <add>, %24, %cst_7 [1] : vector<8x32xf32> to vector<8xf32>
    %26 = vector.shape_cast %25 : vector<8xf32> to vector<8x1xf32>
    %cst_8 = arith.constant 0.000000e+00 : f32
    %27 = vector.broadcast %cst_8 : f32 to vector<8x1xf32>
    %28 = arith.subf %27, %26 : vector<8x1xf32>
    %cst_9 = arith.constant 1.500000e+00 : f32
    %29 = vector.broadcast %cst_9 : f32 to vector<8x1xf32>
    %30 = arith.divf %28, %29 : vector<8x1xf32>
    %31 = math.exp %30 : vector<8x1xf32>
    %32 = arith.mulf %22, %31 : vector<8x1xf32>
    %33 = math.log %32 : vector<8x1xf32>
    %cst_10 = arith.constant -1.000000e+02 : f32
    %34 = vector.broadcast %cst_10 : f32 to vector<8x1xf32>
    %35 = arith.maximumf %33, %34 : vector<8x1xf32>
    %36 = vector.shape_cast %35 : vector<8x1xf32> to vector<1x8x1xf32>
    %cst_11 = arith.constant dense<0.000000e+00> : vector<1xf32>
    %37 = vector.multi_reduction <add>, %36, %cst_11 [1, 2] : vector<1x8x1xf32> to vector<1xf32>
    %38 = vector.shape_cast %37 : vector<1xf32> to vector<1x1x1xf32>
    %39 = vector.extract %38[0, 0, 0] : f32 from vector<1x1x1xf32>
    %cst_12 = arith.constant 0.000000e+00 : f32
    %40 = vector.broadcast %cst_12 : f32 to vector<8x1xf32>
    %c0_13 = arith.constant 0 : index
    %c0_14 = arith.constant 0 : index
    %41 = tpu.strided_load %arg3[%c0_13, %c0_14] {strides = array<i32: 4, 1>} : memref<32x32xf32, #tpu.memory_space<vmem>>, vector<8x32xf32>
    %cst_15 = arith.constant dense<0xFF800000> : vector<8xf32>
    %42 = vector.multi_reduction <maximumf>, %41, %cst_15 [1] : vector<8x32xf32> to vector<8xf32>
    %43 = vector.shape_cast %42 : vector<8xf32> to vector<8x1xf32>
    %44 = vector.broadcast %43 : vector<8x1xf32> to vector<8x32xf32>
    %45 = arith.subf %41, %44 : vector<8x32xf32>
    %46 = math.exp %45 : vector<8x32xf32>
    %cst_16 = arith.constant dense<0.000000e+00> : vector<8xf32>
    %47 = vector.multi_reduction <add>, %46, %cst_16 [1] : vector<8x32xf32> to vector<8xf32>
    %48 = vector.shape_cast %47 : vector<8xf32> to vector<8x1xf32>
    %49 = arith.mulf %10, %46 : vector<8x32xf32>
    %cst_17 = arith.constant dense<0.000000e+00> : vector<8xf32>
    %50 = vector.multi_reduction <add>, %49, %cst_17 [1] : vector<8x32xf32> to vector<8xf32>
    %51 = vector.shape_cast %50 : vector<8xf32> to vector<8x1xf32>
    %52 = arith.divf %51, %48 : vector<8x1xf32>
    %53 = arith.addf %40, %52 : vector<8x1xf32>
    %c1 = arith.constant 1 : index
    %c0_18 = arith.constant 0 : index
    %54 = tpu.strided_load %arg3[%c1, %c0_18] {strides = array<i32: 4, 1>} : memref<32x32xf32, #tpu.memory_space<vmem>>, vector<8x32xf32>
    %cst_19 = arith.constant dense<0xFF800000> : vector<8xf32>
    %55 = vector.multi_reduction <maximumf>, %54, %cst_19 [1] : vector<8x32xf32> to vector<8xf32>
    %56 = vector.shape_cast %55 : vector<8xf32> to vector<8x1xf32>
    %57 = vector.broadcast %56 : vector<8x1xf32> to vector<8x32xf32>
    %58 = arith.subf %54, %57 : vector<8x32xf32>
    %59 = math.exp %58 : vector<8x32xf32>
    %cst_20 = arith.constant dense<0.000000e+00> : vector<8xf32>
    %60 = vector.multi_reduction <add>, %59, %cst_20 [1] : vector<8x32xf32> to vector<8xf32>
    %61 = vector.shape_cast %60 : vector<8xf32> to vector<8x1xf32>
    %62 = arith.mulf %10, %59 : vector<8x32xf32>
    %cst_21 = arith.constant dense<0.000000e+00> : vector<8xf32>
    %63 = vector.multi_reduction <add>, %62, %cst_21 [1] : vector<8x32xf32> to vector<8xf32>
    %64 = vector.shape_cast %63 : vector<8xf32> to vector<8x1xf32>
    %65 = arith.divf %64, %61 : vector<8x1xf32>
    %66 = arith.addf %53, %65 : vector<8x1xf32>
    %c2 = arith.constant 2 : index
    %c0_22 = arith.constant 0 : index
    %67 = tpu.strided_load %arg3[%c2, %c0_22] {strides = array<i32: 4, 1>} : memref<32x32xf32, #tpu.memory_space<vmem>>, vector<8x32xf32>
    %cst_23 = arith.constant dense<0xFF800000> : vector<8xf32>
    %68 = vector.multi_reduction <maximumf>, %67, %cst_23 [1] : vector<8x32xf32> to vector<8xf32>
    %69 = vector.shape_cast %68 : vector<8xf32> to vector<8x1xf32>
    %70 = vector.broadcast %69 : vector<8x1xf32> to vector<8x32xf32>
    %71 = arith.subf %67, %70 : vector<8x32xf32>
    %72 = math.exp %71 : vector<8x32xf32>
    %cst_24 = arith.constant dense<0.000000e+00> : vector<8xf32>
    %73 = vector.multi_reduction <add>, %72, %cst_24 [1] : vector<8x32xf32> to vector<8xf32>
    %74 = vector.shape_cast %73 : vector<8xf32> to vector<8x1xf32>
    %75 = arith.mulf %10, %72 : vector<8x32xf32>
    %cst_25 = arith.constant dense<0.000000e+00> : vector<8xf32>
    %76 = vector.multi_reduction <add>, %75, %cst_25 [1] : vector<8x32xf32> to vector<8xf32>
    %77 = vector.shape_cast %76 : vector<8xf32> to vector<8x1xf32>
    %78 = arith.divf %77, %74 : vector<8x1xf32>
    %79 = arith.addf %66, %78 : vector<8x1xf32>
    %c3 = arith.constant 3 : index
    %c0_26 = arith.constant 0 : index
    %80 = tpu.strided_load %arg3[%c3, %c0_26] {strides = array<i32: 4, 1>} : memref<32x32xf32, #tpu.memory_space<vmem>>, vector<8x32xf32>
    %cst_27 = arith.constant dense<0xFF800000> : vector<8xf32>
    %81 = vector.multi_reduction <maximumf>, %80, %cst_27 [1] : vector<8x32xf32> to vector<8xf32>
    %82 = vector.shape_cast %81 : vector<8xf32> to vector<8x1xf32>
    %83 = vector.broadcast %82 : vector<8x1xf32> to vector<8x32xf32>
    %84 = arith.subf %80, %83 : vector<8x32xf32>
    %85 = math.exp %84 : vector<8x32xf32>
    %cst_28 = arith.constant dense<0.000000e+00> : vector<8xf32>
    %86 = vector.multi_reduction <add>, %85, %cst_28 [1] : vector<8x32xf32> to vector<8xf32>
    %87 = vector.shape_cast %86 : vector<8xf32> to vector<8x1xf32>
    %88 = arith.mulf %10, %85 : vector<8x32xf32>
    %cst_29 = arith.constant dense<0.000000e+00> : vector<8xf32>
    %89 = vector.multi_reduction <add>, %88, %cst_29 [1] : vector<8x32xf32> to vector<8xf32>
    %90 = vector.shape_cast %89 : vector<8xf32> to vector<8x1xf32>
    %91 = arith.divf %90, %87 : vector<8x1xf32>
    %92 = arith.addf %79, %91 : vector<8x1xf32>
    %cst_30 = arith.constant 1.000000e+00 : f32
    %93 = vector.broadcast %cst_30 : f32 to vector<8x1xf32>
    %94 = arith.addf %93, %92 : vector<8x1xf32>
    %95 = math.log %94 : vector<8x1xf32>
    %96 = vector.shape_cast %95 : vector<8x1xf32> to vector<1x8x1xf32>
    %cst_31 = arith.constant dense<0.000000e+00> : vector<1xf32>
    %97 = vector.multi_reduction <add>, %96, %cst_31 [1, 2] : vector<1x8x1xf32> to vector<1xf32>
    %98 = vector.shape_cast %97 : vector<1xf32> to vector<1x1x1xf32>
    %99 = vector.extract %98[0, 0, 0] : f32 from vector<1x1x1xf32>
    %cst_32 = arith.constant dense<0.000000e+00> : vector<32xf32>
    %100 = vector.multi_reduction <add>, %10, %cst_32 [0] : vector<8x32xf32> to vector<32xf32>
    %101 = vector.shape_cast %100 : vector<32xf32> to vector<1x32xf32>
    %cst_33 = arith.constant 0.000000e+00 : f32
    %102 = vector.broadcast %cst_33 : f32 to vector<1x1x128xf32>
    %c0_34 = arith.constant 0 : index
    %c0_35 = arith.constant 0 : index
    %c0_36 = arith.constant 0 : index
    %103 = vector.load %arg4[%c0_34, %c0_35, %c0_36] : memref<1x1x128xf32, #tpu.memory_space<vmem>>, vector<1x1x128xf32>
    tpu.vector_store %arg4[%c0_34, %c0_35, %c0_36], %102 {strides = array<i32>} : memref<1x1x128xf32, #tpu.memory_space<vmem>>, vector<1x1x128xf32>,
    %104 = vector.shape_cast %101 : vector<1x32xf32> to vector<1x1x32xf32>
    %c0_37 = arith.constant 0 : index
    %c0_38 = arith.constant 0 : index
    %c0_39 = arith.constant 0 : index
    %105 = vector.load %arg4[%c0_37, %c0_38, %c0_39] : memref<1x1x128xf32, #tpu.memory_space<vmem>>, vector<1x1x32xf32>
    tpu.vector_store %arg4[%c0_37, %c0_38, %c0_39], %104 {strides = array<i32>} : memref<1x1x128xf32, #tpu.memory_space<vmem>>, vector<1x1x32xf32>,
    %106 = vector.broadcast %39 : f32 to vector<1x1x1xf32>
    %c0_40 = arith.constant 0 : index
    %c0_41 = arith.constant 0 : index
    %c32 = arith.constant 32 : index
    %107 = vector.load %arg4[%c0_40, %c0_41, %c32] : memref<1x1x128xf32, #tpu.memory_space<vmem>>, vector<1x1x1xf32>
    tpu.vector_store %arg4[%c0_40, %c0_41, %c32], %106 {strides = array<i32>} : memref<1x1x128xf32, #tpu.memory_space<vmem>>, vector<1x1x1xf32>,
    %108 = vector.broadcast %99 : f32 to vector<1x1x1xf32>
    %c0_42 = arith.constant 0 : index
    %c0_43 = arith.constant 0 : index
    %c33 = arith.constant 33 : index
    %109 = vector.load %arg4[%c0_42, %c0_43, %c33] : memref<1x1x128xf32, #tpu.memory_space<vmem>>, vector<1x1x1xf32>
    tpu.vector_store %arg4[%c0_42, %c0_43, %c33], %108 {strides = array<i32>} : memref<1x1x128xf32, #tpu.memory_space<vmem>>, vector<1x1x1xf32>,
    return
  }
  func.func @transform_0(%arg0: i32) -> (i32, i32) {
    %c0_i32 = arith.constant 0 : i32
    %c0_i32_0 = arith.constant 0 : i32
    return %arg0, %c0_i32 : i32, i32
  }
  func.func @transform_1(%arg0: i32) -> (i32, i32) {
    %c0_i32 = arith.constant 0 : i32
    %c0_i32_0 = arith.constant 0 : i32
    return %arg0, %c0_i32 : i32, i32
  }
  func.func @transform_2(%arg0: i32) -> (i32, i32) {
    %c0_i32 = arith.constant 0 : i32
    %c0_i32_0 = arith.constant 0 : i32
    return %arg0, %c0_i32 : i32, i32
  }
  func.func @transform_3(%arg0: i32) -> (i32, i32, i32) {
    %c0_i32 = arith.constant 0 : i32
    %c0_i32_0 = arith.constant 0 : i32
    %c0_i32_1 = arith.constant 0 : i32
    return %arg0, %c0_i32, %c0_i32_0 : i32, i32, i32
  }
}

</mosaic_0001>

<bundles_post_ra>
// kernel: tpu_custom_call.1
= control target key start
LH: loop header
LB: loop body
LE: loop exit
PB: predicated region body
PF: predicated region fallthrough
CT: control target
= control target key end

     0   :  { %8 = vsyncpa [#allocation3], 0  ;;  %s451_s0 = inlined_call_operand.hbm [shape: f32[8,32], index: 0, kind: input, shape index: {}]   ;;  %s452_s1 = inlined_call_operand.hbm [shape: f32[8,32], index: 1, kind: input, shape index: {}]   ;;  %s453_s2 = inlined_call_operand.hbm [shape: f32[32,32], index: 2, kind: input, shape index: {}]   ;;  %s454_s3 = inlined_call_operand.hbm [shape: f32[1,1,128], index: 3, kind: output, shape index: {}]  }
   0x1   :  { %9 = vsyncpa [#allocation6], 0 }
   0x2   :  { %10 = vsyncpa [#allocation4], 0  ;;  %s357_s12 = smov [#allocation5]   ;;  %s358_s14 = smov [#allocation2]  }
   0x3   :  { %s27_s13 = sshll.u32 %s357_s12, 4  ;;  %s17_s15 = sshll.u32 %s358_s14, 4  ;;  %s28_s13 = int_to_ptr.vmem [resolvable:$true] %s27_s13  ;;  %s18_s15 = int_to_ptr.vmem [resolvable:$true] %s17_s15 }
   0x4   :  { %s263_s18 = scalar_lea.hbm %s452_s1, 128 }
   0x5   :  { %p264_p0 = scmp.ne.s32.totalorder %s452_s1, %s263_s18  ;;  %p267_p1 = scmp.lt.u32.totalorder %s263_s18, %s452_s1 }
   0x7   :  { %p269_p2 = pnand %p267_p1, %p264_p0 }
   0x9   :  { %272 = shalt.err (!%p269_p2)
}
   0xa   :  { %s273_s23 = scalar_lea.vmem %s28_s13, 128  ;;  %p278_p4 = scmp.lt.s32.totalorder %s28_s13, %s28_s13 }
   0xb   :  { %p274_p3 = scmp.ne.s32.totalorder %s28_s13, %s273_s23  ;;  %p279_p5 = scmp.lt.s32.totalorder %s273_s23, %s273_s23 }
   0xd   :  { %p280_p6 = por %p279_p5, %p278_p4 }
   0xf   :  { %p281_p7 = pnand %p280_p6, %p274_p3 }
  0x11   :  { %284 = shalt.err (!%p281_p7)
}
  0x12   :  { %30 = dma.hbm_to_vmem [thread:$0]  %s452_s1, 128, %s28_s13, [#allocation6]  }
  0x13   :  { %s285_s28 = scalar_lea.hbm %s451_s0, 128 }
  0x14   :  { %p286_p8 = scmp.ne.s32.totalorder %s451_s0, %s285_s28  ;;  %p289_p9 = scmp.lt.u32.totalorder %s285_s28, %s451_s0 }
  0x16   :  { %p291_p10 = pnand %p289_p9, %p286_p8 }
  0x18   :  { %294 = shalt.err (!%p291_p10)
}
  0x19   :  { %s295_s6 = scalar_lea.vmem %s18_s15, 128  ;;  %p300_p12 = scmp.lt.s32.totalorder %s18_s15, %s18_s15 }
  0x1a   :  { %p296_p11 = scmp.ne.s32.totalorder %s18_s15, %s295_s6  ;;  %p301_p13 = scmp.lt.s32.totalorder %s295_s6, %s295_s6 }
  0x1c   :  { %p302_p0 = por %p301_p13, %p300_p12 }
  0x1e   :  { %p303_p1 = pnand %p302_p0, %p296_p11 }
  0x20   :  { %306 = shalt.err (!%p303_p1)
}
  0x21   :  { %20 = dma.hbm_to_vmem [thread:$0]  %s451_s0, 128, %s18_s15, [#allocation3]  }
  0x22   :  { %s359_s8 = smov [#allocation7]   ;;  %s307_s12 = scalar_lea.hbm %s453_s2, 512 }
  0x23   :  { %s36_s9 = sshll.u32 %s359_s8, 4  ;;  %p308_p2 = scmp.ne.s32.totalorder %s453_s2, %s307_s12  ;;  %s37_s9 = int_to_ptr.vmem [resolvable:$true] %s36_s9 }
  0x24   :  { %p311_p3 = scmp.lt.u32.totalorder %s307_s12, %s453_s2 }
  0x26   :  { %p313_p4 = pnand %p311_p3, %p308_p2 }
  0x28   :  { %316 = shalt.err (!%p313_p4)
}
  0x29   :  { %s317_s18 = scalar_lea.vmem %s37_s9, 512  ;;  %p322_p6 = scmp.lt.s32.totalorder %s37_s9, %s37_s9 }
  0x2a   :  { %p318_p5 = scmp.ne.s32.totalorder %s37_s9, %s317_s18  ;;  %p323_p7 = scmp.lt.s32.totalorder %s317_s18, %s317_s18 }
  0x2c   :  { %p324_p8 = por %p323_p7, %p322_p6 }
  0x2e   :  { %p325_p9 = pnand %p324_p8, %p318_p5 }
  0x30   :  { %328 = shalt.err (!%p325_p9)
}
  0x31   :  { %s360_s0 = smov 128   ;;  %s361_s15 = smov 8  }
  0x32   :  { %42 = dma.hbm_to_vmem [thread:$0]  %s453_s2, 512, %s37_s9, [#allocation6], %s360_s0, %s360_s0, %s361_s15  }
  0x33   :  { %351 = dma.done.wait [#allocation3], 128  }
  0x34   :  { %352 = vsyncadd [#allocation3], 4294967168 }
  0x35   :  { %353 = dma.done.wait [#allocation6], 640  }
  0x36   :  { %354 = vsyncadd [#allocation6], 4294966656  ;;  %vm54_vm0 = vcmask 261120   ;;  %v52_v0 = vld [vmem:[#allocation2] sm:$0xff]  ;;  %v53_v1 = vld [vmem:[#allocation5] sm:$0xff]  ;;  %v362_v32 = vmov 0.0  }
  0x37   :  { %v55_v2 = vsel %vm54_vm0, %v52_v0, -inf  ;;  %v66_v3 = vsel %vm54_vm0, %v53_v1, -inf  ;;  %v106_v4 = vld [vmem:[#allocation7] ss:$4 sm:$0xff]  ;;  %v142_v6 = vld [vmem:[#allocation7 + $0x2] ss:$4 sm:$0xff] }
  0x38   :  { %56 = vmax.xlane.f32.xlu0 %v55_v2  ;;  %v107_v5 = vsel %vm54_vm0, %v106_v4, -inf  ;;  %v143_v7 = vsel %vm54_vm0, %v142_v6, -inf  ;;  %v124_v17 = vld [vmem:[#allocation7 + $0x1] ss:$4 sm:$0xff]  ;;  %v160_v23 = vld [vmem:[#allocation7 + $0x3] ss:$4 sm:$0xff] }
  0x39   :  { %v125_v21 = vsel %vm54_vm0, %v124_v17, -inf  ;;  %v161_v26 = vsel %vm54_vm0, %v160_v23, -inf  ;;  %197 = vst [vmem:[#allocation8] sm:$0x1] %v362_v32  ;;  %vm198_vm1 = vcmask 253952   ;;  %vm95_vm2 = vcmask 7168  }
  0x3a   :  { %vm201_vm3 = vcmask 262400   ;;  %s363_s21 = smov [#allocation8]   ;;  %vm204_vm4 = vcmask 270600  }
  0x3b   :  { %s212_s22 = sshll.u32 %s363_s21, 4  ;;  %s213_s22 = int_to_ptr.vmem [resolvable:$true] %s212_s22 }
  0x3c   :  { %67 = vmax.xlane.f32.xlu0 %v66_v3  ;;  %s329_s24 = scalar_lea.vmem %s213_s22, 16  ;;  %s333_s25 = scalar_lea.vmem %s213_s22, 32 }
  0x3d   :  { %p330_p10 = scmp.ne.s32.totalorder %s213_s22, %s329_s24  ;;  %p334_p11 = scmp.lt.s32.totalorder %s213_s22, %s213_s22 }
  0x3e   :  { %p335_p12 = scmp.lt.s32.totalorder %s333_s25, %s329_s24 }
  0x40   :  { %108 = vmax.xlane.f32.xlu0 %v107_v5  ;;  %p336_p13 = por %p335_p12, %p334_p11 }
  0x42   :  { %p337_p0 = pnand %p336_p13, %p330_p10 }
  0x44   :  { %144 = vmax.xlane.f32.xlu0 %v143_v7 }
  0xc5   :  { %v57_v8 = vpop.xlane.xlu0 %56 }
  0xc6   :  { %v58_v9 = vsub.f32 %v52_v0, %v57_v8 }
  0xc8   :  { %v59_v10 = vmul.f32 1.442695, %v58_v9 }
  0xc9   :  { %v68_v11 = vpop.xlane.xlu0 %67 }
  0xca   :  { %233 = vpow2.f32 %v59_v10  ;;  %v69_v12 = vsub.f32 %v53_v1, %v68_v11 }
  0xcc   :  { %v70_v13 = vmul.f32 1.442695, %v69_v12 }
  0xcd   :  { %v109_v18 = vpop.xlane.xlu0 %108 }
  0xce   :  { %235 = vpow2.f32 %v70_v13  ;;  %v110_v20 = vsub.f32 %v106_v4, %v109_v18 }
  0xd0   :  { %v111_v22 = vmul.f32 1.442695, %v110_v20 }
  0xd1   :  { %v145_v24 = vpop.xlane.xlu0 %144 }
  0xd2   :  { %237 = vpow2.f32 %v111_v22  ;;  %v146_v25 = vsub.f32 %v142_v6, %v145_v24 }
  0xd4   :  { %v234_v14 = vpop.eup %233  ;;  %v147_v27 = vmul.f32 1.442695, %v146_v25 }
  0xd5   :  { %v61_v15 = vsel %vm54_vm0, %v234_v14, 0.0 }
  0xd6   :  { %62 = vadd.xlane.f32.xlu1 %v61_v15  ;;  %239 = vpow2.f32 %v147_v27 }
  0xd8   :  { %v236_v16 = vpop.eup %235 }
  0xd9   :  { %v72_v19 = vsel %vm54_vm0, %v236_v16, 0.0 }
  0xda   :  { %73 = vadd.xlane.f32.xlu1 %v72_v19 }
  0xdc   :  { %v238_v28 = vpop.eup %237 }
  0xdd   :  { %v113_v29 = vsel %vm54_vm0, %v238_v28, 0.0 }
  0xde   :  { %126 = vmax.xlane.f32.xlu1 %v125_v21 }
  0xe0   :  { %v240_v30 = vpop.eup %239 }
  0xe1   :  { %v149_v31 = vsel %vm54_vm0, %v240_v30, 0.0 }
  0xe2   :  { %162 = vmax.xlane.f32.xlu1 %v161_v26 }
  0xe6   :  { %114 = vadd.xlane.f32.xlu1 %v113_v29 }
  0xea   :  { %150 = vadd.xlane.f32.xlu1 %v149_v31 }
 0x163   :  { %v63_v33 = vpop.xlane.xlu1 %62 }
 0x164   :  { %241 = vrcp.f32 %v63_v33 }
 0x167   :  { %v74_v34 = vpop.xlane.xlu1 %73 }
 0x168   :  { %243 = vrcp.f32 %v74_v34 }
 0x16b   :  { %v127_v35 = vpop.xlane.xlu1 %126 }
 0x16c   :  { %v128_v36 = vsub.f32 %v124_v17, %v127_v35 }
 0x16e   :  { %v242_v37 = vpop.eup %241  ;;  %v129_v38 = vmul.f32 1.442695, %v128_v36 }
 0x16f   :  { %v65_v39 = vmul.f32 %v242_v37, %v234_v14  ;;  %v163_v40 = vpop.xlane.xlu1 %162 }
 0x170   :  { %245 = vpow2.f32 %v129_v38  ;;  %v164_v41 = vsub.f32 %v160_v23, %v163_v40 }
 0x171   :  { %v116_v42 = vmul.f32 %v238_v28, %v65_v39  ;;  %v190_v43 = vsel %vm54_vm0, %v65_v39, 0.0  ;;  %v152_v48 = vmul.f32 %v240_v30, %v65_v39 }
 0x172   :  { %v244_v44 = vpop.eup %243  ;;  %v165_v45 = vmul.f32 1.442695, %v164_v41  ;;  %v191_v46 = vrot.slane %v190_v43, 4 }
 0x173   :  { %v117_v47 = vsel %vm54_vm0, %v116_v42, 0.0  ;;  %v76_v49 = vmul.f32 %v244_v44, %v236_v16  ;;  %v153_v53 = vsel %vm54_vm0, %v152_v48, 0.0  ;;  %v115_v5 = vpop.xlane.xlu1 %114 }
 0x174   :  { %247 = vpow2.f32 %v165_v45  ;;  %118 = vadd.xlane.f32.xlu1 %v117_v47  ;;  %v192_v50 = vadd.f32 %v191_v46, %v190_v43 }
 0x175   :  { %v81_v51 = vsub.f32 %v65_v39, %v76_v49  ;;  %v77_v55 = vmul.f32 %v76_v49, %v65_v39  ;;  %249 = vrcp.f32 %v115_v5 }
 0x176   :  { %v193_v52 = vrot.slane %v192_v50, 2 }
 0x177   :  { %v82_v54 = vmul.f32 %v81_v51, %v81_v51  ;;  %v78_v60 = vsel %vm54_vm0, %v77_v55, 0.0  ;;  %v151_v7 = vpop.xlane.xlu1 %150 }
 0x178   :  { %154 = vadd.xlane.f32.xlu1 %v153_v53  ;;  %v194_v56 = vadd.f32 %v193_v52, %v192_v50  ;;  %251 = vrcp.f32 %v151_v7 }
 0x179   :  { %v83_v57 = vsel %vm54_vm0, %v82_v54, 0.0 }
 0x17a   :  { %v246_v58 = vpop.eup %245  ;;  %84 = vadd.xlane.f32.xlu0 %v83_v57  ;;  %v195_v59 = vrot.slane %v194_v56, 1 }
 0x17b   :  { %v131_v61 = vsel %vm54_vm0, %v246_v58, 0.0  ;;  %v134_v1 = vmul.f32 %v246_v58, %v65_v39 }
 0x17c   :  { %79 = vadd.xlane.f32.xlu1 %v78_v60  ;;  %v196_v62 = vadd.f32 %v195_v59, %v194_v56 }
 0x17d   :  { %v135_v2 = vsel %vm54_vm0, %v134_v1, 0.0 }
 0x17e   :  { %v248_v63 = vpop.eup %247  ;;  %132 = vadd.xlane.f32.xlu0 %v131_v61  ;;  %199 = vst.msk [vmem:[#allocation8] sm:$0x1] %vm198_vm1, %v196_v62 }
 0x17f   :  { %v167_v0 = vsel %vm54_vm0, %v248_v63, 0.0  ;;  %v170_v3 = vmul.f32 %v248_v63, %v65_v39  ;;  %v250_v15 = vpop.eup %249 }
 0x181   :  { %v171_v4 = vsel %vm54_vm0, %v170_v3, 0.0 }
 0x182   :  { %168 = vadd.xlane.f32.xlu0 %v167_v0  ;;  %v252_v17 = vpop.eup %251 }
 0x186   :  { %136 = vadd.xlane.f32.xlu0 %v135_v2 }
 0x18a   :  { %172 = vadd.xlane.f32.xlu0 %v171_v4 }
 0x201   :  { %v119_v11 = vpop.xlane.xlu1 %118 }
 0x202   :  { %v121_v19 = vmul.f32 %v250_v15, %v119_v11 }
 0x205   :  { %v155_v14 = vpop.xlane.xlu1 %154 }
 0x206   :  { %v157_v23 = vmul.f32 %v252_v17, %v155_v14 }
 0x207   :  { %v85_v6 = vpop.xlane.xlu0 %84 }
 0x208   :  { %v86_v8 = vsub.f32 0.0, %v85_v6 }
 0x209   :  { %v80_v22 = vpop.xlane.xlu1 %79 }
 0x20a   :  { %v88_v9 = vmul.f32 0.6666667, %v86_v8 }
 0x20b   :  { %v133_v10 = vpop.xlane.xlu0 %132 }
 0x20c   :  { %v89_v12 = vmul.f32 1.442695, %v88_v9  ;;  %253 = vrcp.f32 %v133_v10 }
 0x20e   :  { %255 = vpow2.f32 %v89_v12 }
 0x20f   :  { %v169_v13 = vpop.xlane.xlu0 %168 }
 0x210   :  { %257 = vrcp.f32 %v169_v13 }
 0x213   :  { %v137_v16 = vpop.xlane.xlu0 %136 }
 0x216   :  { %v254_v18 = vpop.eup %253 }
 0x217   :  { %v139_v20 = vmul.f32 %v254_v18, %v137_v16  ;;  %v173_v27 = vpop.xlane.xlu0 %172 }
 0x218   :  { %v256_v21 = vpop.eup %255 }
 0x219   :  { %v91_v24 = vmul.f32 %v256_v21, %v80_v22  ;;  %v140_v25 = vadd.f32 %v139_v20, %v121_v19 }
 0x21a   :  { %v258_v26 = vpop.eup %257 }
 0x21b   :  { %259 = vlog2.f32 %v91_v24  ;;  %v158_v28 = vadd.f32 %v157_v23, %v140_v25  ;;  %v175_v29 = vmul.f32 %v258_v26, %v173_v27 }
 0x21d   :  { %v176_v30 = vadd.f32 %v175_v29, %v158_v28 }
 0x21f   :  { %v177_v31 = vadd.f32 1.0, %v176_v30 }
 0x221   :  { %261 = vlog2.f32 %v177_v31 }
 0x225   :  { %v260_v32 = vpop.eup %259 }
 0x226   :  { %v93_v33 = vmul.f32 0.6931472, %v260_v32 }
 0x228   :  { %v94_v34 = vmax.f32 %v93_v33, -100.0 }
 0x22a   :  { %v96_v35 = vsel %vm95_vm2, %v94_v34, 0.0 }
 0x22b   :  { %v262_v36 = vpop.eup %261  ;;  %97 = vadd.xlane.f32.xlu0 %v96_v35 }
 0x22c   :  { %v179_v37 = vmul.f32 0.6931472, %v262_v36 }
 0x22e   :  { %v180_v38 = vsel %vm95_vm2, %v179_v37, 0.0 }
 0x22f   :  { %181 = vadd.xlane.f32.xlu1 %v180_v38 }
 0x2b8   :  { %v98_v39 = vpop.xlane.xlu0 %97 }
 0x2b9   :  { %v99_v40 = vrot.slane %v98_v39, 4 }
 0x2bb   :  { %v100_v41 = vadd.f32 %v99_v40, %v98_v39 }
 0x2bc   :  { %v182_v42 = vpop.xlane.xlu1 %181 }
 0x2bd   :  { %v101_v43 = vrot.slane %v100_v41, 2  ;;  %v183_v44 = vrot.slane %v182_v42, 4 }
 0x2bf   :  { %v184_v45 = vadd.f32 %v183_v44, %v182_v42  ;;  %v102_v46 = vadd.f32 %v101_v43, %v100_v41 }
 0x2c1   :  { %v185_v47 = vrot.slane %v184_v45, 2  ;;  %v103_v48 = vrot.slane %v102_v46, 1 }
 0x2c3   :  { %v186_v49 = vadd.f32 %v185_v47, %v184_v45  ;;  %v104_v50 = vadd.f32 %v103_v48, %v102_v46 }
 0x2c5   :  { %222 = vpush %v104_v50  ;;  %v187_v51 = vrot.slane %v186_v49, 1 }
 0x2c7   :  { %v188_v52 = vadd.f32 %v187_v51, %v186_v49 }
 0x2c9   :  { %224 = vpush %v188_v52 }
 0x2f6   :  { %s223_s2 = spop %222 }
 0x2f7   :  { %v200_v53 = vstv %s223_s2 }
 0x2f8   :  { %202 = vst.msk [vmem:[#allocation8] sm:$0x1] %vm201_vm3, %v200_v53 }
 0x2fa   :  { %s225_s23 = spop %224 }
 0x2fb   :  { %v203_v54 = vstv %s225_s23 }
 0x2fc   :  { %205 = vst.msk [vmem:[#allocation8] sm:$0x1] %vm204_vm4, %v203_v54 }
 0x2fd   :  { %340 = shalt.err (!%p337_p0)
}
 0x2fe   :  { %s341_s28 = scalar_lea.hbm %s454_s3, 16 }
 0x2ff   :  { %p342_p1 = scmp.ne.s32.totalorder %s454_s3, %s341_s28  ;;  %p345_p2 = scmp.lt.u32.totalorder %s341_s28, %s454_s3 }
 0x301   :  { %p347_p3 = pnand %p345_p2, %p342_p1 }
 0x303   :  { %350 = shalt.err (!%p347_p3)
}
 0x304   :  { %215 = dma.vmem_to_hbm [thread:$0]  %s213_s22, 16, %s454_s3, [#allocation4]  }
 0x305   :  { %355 = dma.done.wait [#allocation4], 16  }
 0x306   :  { %356 = vsyncadd [#allocation4], 4294967280 }
 0x307   :  { %219 = vsyncpa [#allocation3], 1 }
 0x308   :  { %220 = vsyncpa [#allocation6], 1 }
 0x309   :  { %221 = vsyncpa [#allocation4], 1 }

</bundles_post_ra>
